<compile_context>
chip_gen: v5e
topology: v5e:2x2
jax: 0.10.0
libtpu: 0.0.40
codegen_flags: <defaults>
</compile_context>

<pallas_src>
import jax
import jax.numpy as jnp
from jax.experimental import pallas as pl
from jax.experimental.pallas import tpu as pltpu


def _identity_kernel(x_ref, o_ref):
    # Pass-through of the current VMEM tile.
    o_ref[...] = x_ref[...]


_MAX_LANES = 4096   # lane-dense last dim, multiple of 128
_MIN_STEPS = 8      # target grid steps for balanced 2-TC sharding (v7x)


def _target_tile_bytes() -> int:
    """Per-tile VMEM target: in+out double-buffered uses ~4x this."""
    try:
        kind = jax.devices()[0].device_kind.lower()
    except Exception:  # pragma: no cover - defensive only
        kind = ""
    if "v6" in kind:
        return 4 * 1024 * 1024   # 16 MiB total << 32 MiB default scoped VMEM
    return 2 * 1024 * 1024       # safe for v5e (16 MiB scoped) and v7x (64 MiB)


def _pick_lanes(total: int) -> int:
    """Largest multiple of 128 that divides `total`, capped at _MAX_LANES (0 if none)."""
    best = 0
    cand = 128
    limit = min(total, _MAX_LANES)
    while cand <= limit:
        if total % cand == 0:
            best = cand
        cand += 128
    return best


def _sublane_packing(itemsize: int) -> int:
    """Sublane rounding factor per dtype: 8 (32-bit), 16 (16-bit), 32 (8-bit)."""
    return max(8, 8 * (4 // max(1, itemsize)))


def _identity_copy_2d(flat: jax.Array, *, donate_input: bool = False) -> jax.Array:
    """Lane-dense 2D Pallas copy of a (rows, lanes) array, lanes % 128 == 0."""
    rows, lanes = flat.shape
    itemsize = flat.dtype.itemsize
    sub = _sublane_packing(itemsize)
    target = _target_tile_bytes()

    if rows < sub:
        tr = rows  # block row dim == full array extent (always legal)
    else:
        cap = max(sub, (target // (lanes * itemsize)) // sub * sub)
        tr = max(sub, min((rows // sub) * sub, cap))
        # Prefer >= _MIN_STEPS grid steps so the "parallel" axis shards evenly
        # across v7x's two TensorCores (no effect on single-TC v5e/v6e).
        if rows // sub >= _MIN_STEPS:
            while pl.cdiv(rows, tr) < _MIN_STEPS and tr > sub:
                tr = max(sub, (tr // 2) // sub * sub)

    grid = (pl.cdiv(rows, tr),)
    total_bytes = rows * lanes * itemsize

    extra = {}
    if donate_input:
        # Only beneficial when the caller donates the input buffer; otherwise
        # XLA inserts a defensive copy, so this stays opt-in.
        extra["input_output_aliases"] = {0: 0}

    return pl.pallas_call(
        _identity_kernel,
        out_shape=jax.ShapeDtypeStruct(flat.shape, flat.dtype),
        grid=grid,
        in_specs=[pl.BlockSpec((tr, lanes), lambda i: (i, 0))],
        out_specs=pl.BlockSpec((tr, lanes), lambda i: (i, 0)),
        compiler_params=pltpu.CompilerParams(
            dimension_semantics=("parallel",)),
        cost_estimate=pl.CostEstimate(
            flops=0, transcendentals=0, bytes_accessed=2 * total_bytes),
        **extra,
    )(flat)


def identity(x: jax.Array, *, materialize: bool = False,
             donate_input: bool = False) -> jax.Array:
    """Identity forward pass: output == input (same shape, dtype, values).

    Default (`materialize=False`) is a true pass-through — 0 bytes of HBM
    traffic, the asymptotic optimum for nn.Identity.  `materialize=True` runs
    the explicit Pallas copy kernel (1 read + 1 write of the whole array).
    """
    if not materialize:
        return x

    orig_shape = x.shape
    total = x.size
    if total == 0:
        return x

    lanes = _pick_lanes(total)
    if lanes:
        # Lane-dense path: reshape is free metadata, no padding, no slicing.
        out = _identity_copy_2d(x.reshape(total // lanes, lanes),
                                donate_input=donate_input)
        return out.reshape(orig_shape)

    # Fallback: x.size not a multiple of 128.  Run the lane-dense kernel on the
    # 128*q prefix and stitch the <128-element tail back outside the kernel
    # (avoids 1-sublane tiles with 8x VMEM padding and masked stores).
    flat = x.reshape(-1)
    q, r = divmod(total, 128)
    if q == 0:
        # Fewer than 128 elements: a kernel tile would be pure overhead.
        return x
    head = _identity_copy_2d(flat[: q * 128].reshape(q, 128))
    out = jnp.concatenate([head.reshape(-1), flat[q * 128:]]) if r else head.reshape(-1)
    return out.reshape(orig_shape)


if __name__ == "__main__":
    key = jax.random.PRNGKey(0)

    # NCHW input consistent with a conv-style backbone: batch=2, ch=4, 16x16.
    x = jax.random.normal(key, (2, 4, 16, 16), dtype=jnp.float32)

    # Default path: true pass-through (0 bytes moved).
    y_fast = identity(x)
    jax.block_until_ready(y_fast)
    assert y_fast.shape == x.shape and y_fast.dtype == x.dtype
    assert bool(jnp.all(y_fast == x))

    # Explicit Pallas copy kernel (lane-dense path).
    y = identity(x, materialize=True)
    jax.block_until_ready(y)
    assert y.shape == x.shape, (y.shape, x.shape)
    assert y.dtype == x.dtype, (y.dtype, x.dtype)
    assert bool(jnp.all(y == x)), "identity output mismatch (lane-dense path)"

    # Sub-32-bit dtype exercises dtype-aware sublane tiling.
    xb = jax.random.normal(jax.random.PRNGKey(0), (4, 8, 32)).astype(jnp.bfloat16)
    yb = identity(xb, materialize=True)
    jax.block_until_ready(yb)
    assert yb.shape == xb.shape and yb.dtype == xb.dtype
    assert bool(jnp.all(yb == xb)), "identity output mismatch (bf16 path)"

    # Non-multiple-of-128 total exercises the prefix-kernel + tail fallback.
    x2 = jax.random.normal(jax.random.PRNGKey(0), (3, 5, 17), dtype=jnp.float32)
    y2 = identity(x2, materialize=True)
    jax.block_until_ready(y2)
    assert y2.shape == x2.shape and y2.dtype == x2.dtype
    assert bool(jnp.all(y2 == x2)), "identity output mismatch (fallback path)"

    print("KERNEL_OK")
</pallas_src>

<mosaic_0001>
module attributes {stable_mosaic.version = 11 : i64} {
  func.func @_identity_kernel(%arg0: i32, %arg1: memref<1x2048xf32, #tpu.memory_space<vmem>>, %arg2: memref<1x2048xf32, #tpu.memory_space<vmem>>) attributes {dimension_semantics = [#tpu.dimension_semantics<parallel>], iteration_bounds = array<i64: 1>, scalar_prefetch = 0 : i64, scratch_operands = 0 : i64, tpu.core_type = #tpu.core_type<tc>, window_params = [{transform_indices = @transform_0, window_bounds = array<i64: 1, 2048>}, {transform_indices = @transform_1, window_bounds = array<i64: 1, 2048>}]} {
    %c0 = arith.constant 0 : index
    %c0_0 = arith.constant 0 : index
    %0 = vector.load %arg1[%c0, %c0_0] : memref<1x2048xf32, #tpu.memory_space<vmem>>, vector<1x2048xf32>
    %c0_1 = arith.constant 0 : index
    %c0_2 = arith.constant 0 : index
    %1 = vector.load %arg2[%c0_1, %c0_2] : memref<1x2048xf32, #tpu.memory_space<vmem>>, vector<1x2048xf32>
    tpu.vector_store %arg2[%c0_1, %c0_2], %0 {strides = array<i32>} : memref<1x2048xf32, #tpu.memory_space<vmem>>, vector<1x2048xf32>,
    return
  }
  func.func @transform_0(%arg0: i32) -> (i32, i32) {
    %c0_i32 = arith.constant 0 : i32
    %c0_i32_0 = arith.constant 0 : i32
    return %arg0, %c0_i32 : i32, i32
  }
  func.func @transform_1(%arg0: i32) -> (i32, i32) {
    %c0_i32 = arith.constant 0 : i32
    %c0_i32_0 = arith.constant 0 : i32
    return %arg0, %c0_i32 : i32, i32
  }
}

</mosaic_0001>

<bundles_post_ra>
// kernel: tpu_custom_call.1
= control target key start
LH: loop header
LB: loop body
LE: loop exit
PB: predicated region body
PF: predicated region fallthrough
CT: control target
= control target key end

     0   :  { %6 = vsyncpa [#allocation3], 0  ;;  %s116_s0 = inlined_call_operand.hbm [shape: f32[1,2048], index: 0, kind: input, shape index: {}]   ;;  %s117_s1 = inlined_call_operand.hbm [shape: f32[1,2048], index: 1, kind: output, shape index: {}]  }
   0x1   :  { %7 = vsyncpa [#allocation4], 0  ;;  %s13_s8 = sshll.u32 %s116_s0, 4  ;;  %s98_s9 = smov [#allocation2]   ;;  %s14_s8 = int_to_ptr.hbm [resolvable:$true] %s13_s8 }
   0x2   :  { %s15_s10 = sshll.u32 %s98_s9, 4  ;;  %s16_s10 = int_to_ptr.vmem [resolvable:$true] %s15_s10 }
   0x3   :  { %18 = dma.hbm_to_vmem [thread:$0]  %s14_s8, 256, %s16_s10, [#allocation3]  }
   0x4   :  { %94 = dma.done.wait [#allocation3], 256  }
   0x5   :  { %95 = vsyncadd [#allocation3], 4294967040  ;;  %s99_s11 = smov [#allocation5]   ;;  %s34_s15 = sshll.u32 %s117_s1, 4  ;;  %v23_v0 = vld [vmem:[#allocation2] sm:$0xff]  ;;  %v24_v1 = vld [vmem:[#allocation2 + $0x8] sm:$0xff]  ;;  %s35_s15 = int_to_ptr.hbm [resolvable:$true] %s34_s15 }
   0x6   :  { %s32_s12 = sshll.u32 %s99_s11, 4  ;;  %25 = vst [vmem:[#allocation5] sm:$0xff] %v23_v0  ;;  %s33_s12 = int_to_ptr.vmem [resolvable:$true] %s32_s12 }
   0x7   :  { %26 = vst [vmem:[#allocation5 + $0x8] sm:$0xff] %v24_v1 }
   0x8   :  { %37 = dma.vmem_to_hbm [thread:$0]  %s33_s12, 256, %s35_s15, [#allocation4]  }
   0x9   :  { %96 = dma.done.wait [#allocation4], 256  }
   0xa   :  { %97 = vsyncadd [#allocation4], 4294967040 }
   0xb   :  { %42 = vsyncpa [#allocation3], 1 }
   0xc   :  { %43 = vsyncpa [#allocation4], 1 }

</bundles_post_ra>
